<compile_context>
chip_gen: v5e
topology: v5e:2x2
jax: 0.10.0
libtpu: 0.0.40
codegen_flags: <defaults>
</compile_context>

<pallas_src>
import functools

import jax
import jax.numpy as jnp
import numpy as np
from jax.experimental import pallas as pl
from jax.experimental.pallas import tpu as pltpu


def conv_bn_relu_kernel(x_ref, w_ref, bias_ref, o_ref, *, H):
    """NB whole images (R = NB*H flattened rows) per grid step.

    x_ref:    (R, W*Cin)         bf16, NHWC rows flattened on the lane axis
    w_ref:    (W*Cin, 3*W*Cout)  bf16, kh-stacked block-Toeplitz weights
                                 (BN scale + width padding folded in)
    bias_ref: (1, W*Cout)        f32 fused bias, tiled across W
    o_ref:    (R, W*Cout)        f32 (lane-dense: W*Cout is a multiple of 128)
    """
    R = x_ref.shape[0]
    wc_out = o_ref.shape[1]

    # Single MXU matmul: M = NB*H, K = W*Cin, N = 3*W*Cout, f32 accumulation.
    p = jnp.dot(x_ref[...], w_ref[...], preferred_element_type=jnp.float32)

    # Lane-tile-aligned slices of the three kh partial sums.
    p_top = p[:, 0 * wc_out:1 * wc_out]   # tap reading input row h-1
    p_mid = p[:, 1 * wc_out:2 * wc_out]   # tap reading input row h
    p_bot = p[:, 2 * wc_out:3 * wc_out]   # tap reading input row h+1

    # Height padding: shift partial sums by one row (sublane roll, XLU slot)
    # and zero rows that crossed an image (or block) boundary (VPU select).
    row_in_img = jax.lax.broadcasted_iota(jnp.int32, (R, wc_out), 0) % H
    acc = p_mid
    acc = acc + jnp.where(row_in_img == 0, 0.0,
                          pltpu.roll(p_top, shift=1, axis=0))
    acc = acc + jnp.where(row_in_img == H - 1, 0.0,
                          pltpu.roll(p_bot, shift=R - 1, axis=0))

    # Fused BN bias + ReLU epilogue in f32, lane-dense store.
    o_ref[...] = jnp.maximum(acc + bias_ref[...], 0.0).astype(o_ref.dtype)


def _build_toeplitz_weights(w_oihw, scale, W):
    """Expand a 3x3 OIHW kernel into a (W*Cin, 3*W*Cout) block-Toeplitz RHS.

    Column block kh*W*Cout:(kh+1)*W*Cout holds B_kh with
        B_kh[w_in*Cin + c, w_out*Cout + co] = w[co, c, kh, kw] * scale[co]
    for w_in = w_out + kw - 1; taps falling outside [0, W) are dropped, which
    implements the width zero-padding for free.
    """
    Cout, Cin, KH, KW = w_oihw.shape
    assert KH == 3 and KW == 3
    w_hwio = jnp.transpose(w_oihw, (2, 3, 1, 0)) * scale        # (3,3,Cin,Cout)

    # D[kw, w_out, p] = 1  iff padded input column p == w_out + kw.
    d = np.stack([np.eye(W, W + 2, k=kw, dtype=np.float32) for kw in range(3)])
    d = jnp.asarray(d)

    # B_pad[kh, p, c, w_out, co] = sum_kw D[kw, w_out, p] * w_hwio[kh, kw, c, co]
    b_pad = jnp.einsum("kwp,hkio->hpiwo", d, w_hwio)
    b_pad = b_pad.reshape(3, (W + 2) * Cin, W * Cout)
    b = b_pad[:, Cin:(W + 1) * Cin, :]                # drop width-halo rows
    # Stack the three kh matrices along the output (lane) axis.
    b = jnp.transpose(b, (1, 0, 2)).reshape(W * Cin, 3 * W * Cout)
    return b.astype(jnp.bfloat16)


def _pick_batch_tile(n, h, max_rows=1024):
    """Largest divisor of n whose row-block NB*H stays comfortably in VMEM."""
    nb = 1
    for cand in range(1, n + 1):
        if n % cand == 0 and cand * h <= max_rows:
            nb = cand
    return nb


def conv_relu_forward(x_nchw, w_oihw, conv_bias, bn_gamma, bn_beta,
                      bn_mean, bn_var, eps=1e-5):
    """ConvRelu.forward: Conv2d(3x3, pad=1) -> BatchNorm2d(eval) -> ReLU.

    x_nchw: (N, Cin, H, W) float32, returns (N, Cout, H, W) float32.
    """
    N, Cin, H, W = x_nchw.shape
    Cout = w_oihw.shape[0]

    # Fold BN (eval mode): scale goes into the weights (one-time parameter
    # transform), only a per-channel bias remains for the kernel epilogue.
    scale = bn_gamma / jnp.sqrt(bn_var + eps)
    bias = (conv_bias - bn_mean) * scale + bn_beta

    w_big = _build_toeplitz_weights(w_oihw, scale, W)       # (W*Cin, 3*W*Cout)
    bias_tiled = jnp.tile(bias, W).reshape(1, W * Cout).astype(jnp.float32)

    # NCHW -> lane-major (N*H, W*Cin) rows, bf16 operands for the MXU.
    # No jnp.pad pass: width padding lives in w_big, height padding in-kernel.
    # (If the surrounding model stayed in this layout, both transposes could
    # also be dropped.)
    x_rows = jnp.transpose(x_nchw, (0, 2, 3, 1)).reshape(N * H, W * Cin)
    x_rows = x_rows.astype(jnp.bfloat16)

    NB = _pick_batch_tile(N, H)          # whole images per grid step
    R = NB * H

    out_rows = pl.pallas_call(
        functools.partial(conv_bn_relu_kernel, H=H),
        out_shape=jax.ShapeDtypeStruct((N * H, W * Cout), jnp.float32),
        grid_spec=pltpu.PrefetchScalarGridSpec(
            num_scalar_prefetch=0,
            grid=(N // NB,),
            in_specs=[
                pl.BlockSpec((R, W * Cin), lambda i: (i, 0)),
                pl.BlockSpec((W * Cin, 3 * W * Cout), lambda i: (0, 0)),
                pl.BlockSpec((1, W * Cout), lambda i: (0, 0)),
            ],
            out_specs=pl.BlockSpec((R, W * Cout), lambda i: (i, 0)),
        ),
        compiler_params=pltpu.CompilerParams(
            dimension_semantics=("parallel",)),
    )(x_rows, w_big, bias_tiled)

    # (N*H, W*Cout) -> (N, Cout, H, W) to match the PyTorch convention.
    return jnp.transpose(out_rows.reshape(N, H, W, Cout), (0, 3, 1, 2))


if __name__ == "__main__":
    # Shapes consistent with ConvRelu(in_=4, out=8) on a 2x4x16x16 input.
    N, Cin, Cout, H, W = 2, 4, 8, 16, 16

    key = jax.random.PRNGKey(0)
    kx, kw, kb = jax.random.split(key, 3)

    x = jax.random.normal(kx, (N, Cin, H, W), dtype=jnp.float32)

    # Deterministic parameter init (PyTorch-like uniform fan-in bound).
    fan_in = Cin * 3 * 3
    bound = 1.0 / (fan_in ** 0.5)
    w = jax.random.uniform(kw, (Cout, Cin, 3, 3), jnp.float32, -bound, bound)
    b = jax.random.uniform(kb, (Cout,), jnp.float32, -bound, bound)

    # BatchNorm2d default params / running stats.
    gamma = jnp.ones((Cout,), jnp.float32)
    beta = jnp.zeros((Cout,), jnp.float32)
    run_mean = jnp.zeros((Cout,), jnp.float32)
    run_var = jnp.ones((Cout,), jnp.float32)

    out = conv_relu_forward(x, w, b, gamma, beta, run_mean, run_var)
    out = jax.block_until_ready(out)
    assert out.shape == (N, Cout, H, W)

    eps = 1e-5

    # Reference 1: independent f32 path (loose tol: kernel uses bf16 operands).
    conv = jax.lax.conv_general_dilated(
        x, w, window_strides=(1, 1), padding=((1, 1), (1, 1)),
        dimension_numbers=("NCHW", "OIHW", "NCHW"),
        precision=jax.lax.Precision.HIGHEST)
    conv = conv + b.reshape(1, Cout, 1, 1)
    ref = (conv - run_mean.reshape(1, Cout, 1, 1)) / jnp.sqrt(
        run_var.reshape(1, Cout, 1, 1) + eps)
    ref = ref * gamma.reshape(1, Cout, 1, 1) + beta.reshape(1, Cout, 1, 1)
    ref_f32 = jnp.maximum(ref, 0.0)
    assert jnp.max(jnp.abs(out - ref_f32)) < 3e-2

    # Reference 2: same bf16-quantized folded weights/inputs -> tight tol.
    scale = gamma / jnp.sqrt(run_var + eps)
    wq_hwio = (jnp.transpose(w, (2, 3, 1, 0)) * scale).astype(jnp.bfloat16)
    wq = jnp.transpose(wq_hwio.astype(jnp.float32), (3, 2, 0, 1))   # OIHW
    xq = x.astype(jnp.bfloat16).astype(jnp.float32)
    convq = jax.lax.conv_general_dilated(
        xq, wq, window_strides=(1, 1), padding=((1, 1), (1, 1)),
        dimension_numbers=("NCHW", "OIHW", "NCHW"),
        precision=jax.lax.Precision.HIGHEST)
    biasq = (b - run_mean) * scale + beta
    ref_q = jnp.maximum(convq + biasq.reshape(1, Cout, 1, 1), 0.0)
    assert jnp.max(jnp.abs(out - ref_q)) < 2e-3

    print("KERNEL_OK")
</pallas_src>

<mosaic_0001>
module attributes {stable_mosaic.version = 11 : i64} {
  func.func @conv_bn_relu_kernel(%arg0: i32, %arg1: memref<32x64xbf16, #tpu.memory_space<vmem>>, %arg2: memref<64x384xbf16, #tpu.memory_space<vmem>>, %arg3: memref<1x128xf32, #tpu.memory_space<vmem>>, %arg4: memref<32x128xf32, #tpu.memory_space<vmem>>) attributes {dimension_semantics = [#tpu.dimension_semantics<parallel>], iteration_bounds = array<i64: 1>, scalar_prefetch = 0 : i64, scratch_operands = 0 : i64, tpu.core_type = #tpu.core_type<tc>, window_params = [{transform_indices = @transform_0, window_bounds = array<i64: 32, 64>}, {pipeline_mode = #tpu.pipeline_mode<synchronous>, transform_indices = @transform_1, window_bounds = array<i64: 64, 384>}, {pipeline_mode = #tpu.pipeline_mode<synchronous>, transform_indices = @transform_2, window_bounds = array<i64: 1, 128>}, {transform_indices = @transform_3, window_bounds = array<i64: 32, 128>}]} {
    %c0 = arith.constant 0 : index
    %c0_0 = arith.constant 0 : index
    %0 = vector.load %arg1[%c0, %c0_0] : memref<32x64xbf16, #tpu.memory_space<vmem>>, vector<32x64xbf16>
    %c0_1 = arith.constant 0 : index
    %c0_2 = arith.constant 0 : index
    %1 = vector.load %arg2[%c0_1, %c0_2] : memref<64x384xbf16, #tpu.memory_space<vmem>>, vector<64x384xbf16>
    %cst = arith.constant dense<0.000000e+00> : vector<32x384xf32>
    %2 = tpu.matmul %0, %1, %cst {dimension_numbers = #tpu.dot_dimension_numbers<[1], [0], [0], [1], [0, 0, 1, 1], [], []>} : vector<32x64xbf16>, vector<64x384xbf16>, vector<32x384xf32> -> vector<32x384xf32>
    %3 = vector.extract_strided_slice %2 {offsets = [0, 0], sizes = [32, 128], strides = [1, 1]} : vector<32x384xf32> to vector<32x128xf32>
    %4 = vector.extract_strided_slice %2 {offsets = [0, 128], sizes = [32, 128], strides = [1, 1]} : vector<32x384xf32> to vector<32x128xf32>
    %5 = vector.extract_strided_slice %2 {offsets = [0, 256], sizes = [32, 128], strides = [1, 1]} : vector<32x384xf32> to vector<32x128xf32>
    %6 = tpu.iota {dimensions = array<i32: 0>} : vector<32x128xi32>
    %c16_i32 = arith.constant 16 : i32
    %c0_i32 = arith.constant 0 : i32
    %7 = arith.cmpi eq, %c16_i32, %c0_i32 : i32
    %c1_i32 = arith.constant 1 : i32
    %8 = arith.select %7, %c1_i32, %c16_i32 : i32
    %9 = vector.broadcast %8 : i32 to vector<32x128xi32>
    %10 = arith.remsi %6, %9 : vector<32x128xi32>
    %c0_i32_3 = arith.constant 0 : i32
    %11 = vector.broadcast %c0_i32_3 : i32 to vector<32x128xi32>
    %12 = arith.cmpi ne, %10, %11 : vector<32x128xi32>
    %c0_i32_4 = arith.constant 0 : i32
    %13 = vector.broadcast %c0_i32_4 : i32 to vector<32x128xi32>
    %14 = arith.cmpi slt, %10, %13 : vector<32x128xi32>
    %c0_i32_5 = arith.constant 0 : i32
    %15 = arith.cmpi slt, %8, %c0_i32_5 : i32
    %16 = vector.broadcast %15 : i1 to vector<32x128xi1>
    %17 = vector.broadcast %16 : vector<32x128xi1> to vector<32x128xi1>
    %18 = arith.xori %14, %17 : vector<32x128xi1>
    %19 = arith.andi %18, %12 : vector<32x128xi1>
    %20 = vector.broadcast %8 : i32 to vector<32x128xi32>
    %21 = arith.addi %10, %20 : vector<32x128xi32>
    %22 = arith.select %19, %21, %10 : vector<32x128xi1>, vector<32x128xi32>
    %c0_i32_6 = arith.constant 0 : i32
    %23 = vector.broadcast %c0_i32_6 : i32 to vector<32x128xi32>
    %24 = arith.cmpi eq, %22, %23 : vector<32x128xi32>
    %c1_i32_7 = arith.constant 1 : i32
    %25 = tpu.dynamic_rotate %3 by %c1_i32_7 dim 0 : vector<32x128xf32>, i32 -> vector<32x128xf32>
    %cst_8 = arith.constant 0.000000e+00 : f32
    %26 = vector.broadcast %cst_8 : f32 to vector<32x128xf32>
    %27 = arith.select %24, %26, %25 : vector<32x128xi1>, vector<32x128xf32>
    %28 = arith.addf %4, %27 : vector<32x128xf32>
    %c15_i32 = arith.constant 15 : i32
    %29 = vector.broadcast %c15_i32 : i32 to vector<32x128xi32>
    %30 = arith.cmpi eq, %22, %29 : vector<32x128xi32>
    %c31_i32 = arith.constant 31 : i32
    %31 = tpu.dynamic_rotate %5 by %c31_i32 dim 0 : vector<32x128xf32>, i32 -> vector<32x128xf32>
    %cst_9 = arith.constant 0.000000e+00 : f32
    %32 = vector.broadcast %cst_9 : f32 to vector<32x128xf32>
    %33 = arith.select %30, %32, %31 : vector<32x128xi1>, vector<32x128xf32>
    %34 = arith.addf %28, %33 : vector<32x128xf32>
    %c0_10 = arith.constant 0 : index
    %c0_11 = arith.constant 0 : index
    %35 = vector.load %arg3[%c0_10, %c0_11] : memref<1x128xf32, #tpu.memory_space<vmem>>, vector<1x128xf32>
    %36 = vector.broadcast %35 : vector<1x128xf32> to vector<32x128xf32>
    %37 = arith.addf %34, %36 : vector<32x128xf32>
    %cst_12 = arith.constant 0.000000e+00 : f32
    %38 = vector.broadcast %cst_12 : f32 to vector<32x128xf32>
    %39 = arith.maximumf %37, %38 : vector<32x128xf32>
    %c0_13 = arith.constant 0 : index
    %c0_14 = arith.constant 0 : index
    %40 = vector.load %arg4[%c0_13, %c0_14] : memref<32x128xf32, #tpu.memory_space<vmem>>, vector<32x128xf32>
    tpu.vector_store %arg4[%c0_13, %c0_14], %39 {strides = array<i32>} : memref<32x128xf32, #tpu.memory_space<vmem>>, vector<32x128xf32>,
    return
  }
  func.func @transform_0(%arg0: i32) -> (i32, i32) {
    %c0_i32 = arith.constant 0 : i32
    %c0_i32_0 = arith.constant 0 : i32
    return %arg0, %c0_i32 : i32, i32
  }
  func.func @transform_1(%arg0: i32) -> (i32, i32) {
    %c0_i32 = arith.constant 0 : i32
    %c0_i32_0 = arith.constant 0 : i32
    %c0_i32_1 = arith.constant 0 : i32
    return %c0_i32, %c0_i32_0 : i32, i32
  }
  func.func @transform_2(%arg0: i32) -> (i32, i32) {
    %c0_i32 = arith.constant 0 : i32
    %c0_i32_0 = arith.constant 0 : i32
    %c0_i32_1 = arith.constant 0 : i32
    return %c0_i32, %c0_i32_0 : i32, i32
  }
  func.func @transform_3(%arg0: i32) -> (i32, i32) {
    %c0_i32 = arith.constant 0 : i32
    %c0_i32_0 = arith.constant 0 : i32
    return %arg0, %c0_i32 : i32, i32
  }
}

</mosaic_0001>

<bundles_post_ra>
// kernel: tpu_custom_call.1
= control target key start
LH: loop header
LB: loop body
LE: loop exit
PB: predicated region body
PF: predicated region fallthrough
CT: control target
= control target key end

     0   :  { %8 = vsyncpa [#allocation3], 0  ;;  %s554_s0 = inlined_call_operand.hbm [shape: bf16[32,64], index: 0, kind: input, shape index: {}]   ;;  %s555_s1 = inlined_call_operand.hbm [shape: bf16[64,384], index: 1, kind: input, shape index: {}]   ;;  %s556_s2 = inlined_call_operand.vmem [shape: f32[1,128], index: 2, kind: input, shape index: {}]   ;;  %s557_s3 = inlined_call_operand.hbm [shape: f32[32,128], index: 3, kind: output, shape index: {}]  }
   0x1   :  { %9 = vsyncpa [#allocation6], 0 }
   0x2   :  { %10 = vsyncpa [#allocation4], 0  ;;  %s15_s14 = sshll.u32 %s554_s0, 4  ;;  %s505_s15 = smov [#allocation2]   ;;  %s16_s14 = int_to_ptr.hbm [resolvable:$true] %s15_s14 }
   0x3   :  { %s17_s16 = sshll.u32 %s505_s15, 4  ;;  %s28_s19 = sshll.u32 %s555_s1, 4  ;;  %s18_s16 = int_to_ptr.vmem [resolvable:$true] %s17_s16  ;;  %s29_s19 = int_to_ptr.hbm [resolvable:$true] %s28_s19 }
   0x4   :  { %s506_s20 = smov 64   ;;  %s507_s21 = smov 4  }
   0x5   :  { %23 = dma.hbm_to_vmem [thread:$0]  %s16_s14, 256, %s18_s16, [#allocation3], %s506_s20, %s506_s20, %s507_s21  }
   0x6   :  { %s508_s22 = smov [#allocation5]   ;;  %s509_s24 = smov 192  }
   0x7   :  { %s30_s23 = sshll.u32 %s508_s22, 4  ;;  %s510_s25 = smov 12   ;;  %s31_s23 = int_to_ptr.vmem [resolvable:$true] %s30_s23 }
   0x8   :  { %36 = dma.hbm_to_vmem [thread:$0]  %s29_s19, 1536, %s31_s23, [#allocation6], %s509_s24, %s509_s24, %s510_s25  }
   0x9   :  { %499 = dma.done.wait [#allocation3], 256  }
   0xa   :  { %500 = vsyncadd [#allocation3], 4294967040 }
   0xb   :  { %501 = dma.done.wait [#allocation6], 1536  }
   0xc   :  { %502 = vsyncadd [#allocation6], 4294965760  ;;  %v383_v0 = vld [vmem:[#allocation5 + $0x48] sm:$0xf]  ;;  %v411_v1 = vld [vmem:[#allocation5 + $0x50] sm:$0xf0]  ;;  %v206_v39 = vlaneseq }
   0xd   :  { %v410_v2 = vld [vmem:[#allocation5 + $0x4c] sm:$0xf]  ;;  %v384_v3 = vor.u32 %v411_v1, %v383_v0  ;;  %v385_v4 = vld [vmem:[#allocation5 + $0x54] sm:$0xf0]  ;;  %v391_v5 = vld [vmem:[#allocation5 + $0x50] sm:$0xf] }
   0xe   :  { %v412_v6 = vld [vmem:[#allocation5 + $0x58] sm:$0xf0]  ;;  %v388_v7 = vor.u32 %v410_v2, %v385_v4  ;;  %v371_v9 = vld [vmem:[#allocation5 + $0x30] sm:$0xf]  ;;  %v407_v11 = vld [vmem:[#allocation5 + $0x34] sm:$0xf] }
   0xf   :  { %v392_v8 = vor.u32 %v412_v6, %v391_v5  ;;  %v408_v10 = vld [vmem:[#allocation5 + $0x38] sm:$0xf0]  ;;  %153 = vmatpush.bf16.msra.mxu0 %v384_v3  ;;  %413 = vmatpush.bf16.msra.mxu3 %v384_v3  ;;  %v373_v13 = vld [vmem:[#allocation5 + $0x3c] sm:$0xf0]  ;;  %v379_v14 = vld [vmem:[#allocation5 + $0x38] sm:$0xf] }
  0x10   :  { %v372_v12 = vor.u32 %v408_v10, %v371_v9  ;;  %v409_v15 = vld [vmem:[#allocation5 + $0x40] sm:$0xf0]  ;;  %172 = vmatpush.bf16.msra.mxu1 %v388_v7  ;;  %v376_v16 = vor.u32 %v407_v11, %v373_v13  ;;  %v359_v18 = vld [vmem:[#allocation5 + $0x18] sm:$0xf]  ;;  %v404_v20 = vld [vmem:[#allocation5 + $0x1c] sm:$0xf] }
  0x11   :  { %191 = vmatpush.bf16.msra.mxu2 %v392_v8  ;;  %v380_v17 = vor.u32 %v409_v15, %v379_v14  ;;  %v405_v19 = vld [vmem:[#allocation5 + $0x20] sm:$0xf0]  ;;  %v361_v21 = vld [vmem:[#allocation5 + $0x24] sm:$0xf0]  ;;  %v367_v22 = vld [vmem:[#allocation5 + $0x20] sm:$0xf] }
  0x12   :  { %v406_v23 = vld [vmem:[#allocation5 + $0x28] sm:$0xf0]  ;;  %v360_v24 = vor.u32 %v405_v19, %v359_v18  ;;  %v347_v25 = vld [vmem:[#allocation5] sm:$0xf]  ;;  %v364_v26 = vor.u32 %v404_v20, %v361_v21  ;;  %v401_v29 = vld [vmem:[#allocation5 + $0x4] sm:$0xf] }
  0x13   :  { %154 = vmatpush.bf16.msra.mxu0 %v372_v12  ;;  %414 = vmatpush.bf16.msra.mxu3 %v372_v12  ;;  %v368_v27 = vor.u32 %v406_v23, %v367_v22  ;;  %v402_v28 = vld [vmem:[#allocation5 + $0x8] sm:$0xf0]  ;;  %v349_v30 = vld [vmem:[#allocation5 + $0xc] sm:$0xf0]  ;;  %v355_v31 = vld [vmem:[#allocation5 + $0x8] sm:$0xf] }
  0x14   :  { %173 = vmatpush.bf16.msra.mxu1 %v376_v16  ;;  %v403_v32 = vld [vmem:[#allocation5 + $0x10] sm:$0xf0]  ;;  %v348_v33 = vor.u32 %v402_v28, %v347_v25  ;;  %v352_v34 = vor.u32 %v401_v29, %v349_v30  ;;  %v400_v37 = vld [vmem:[#allocation2 + $0x8] sm:$0xff]  ;;  %vm142_vm0 = vcmask 523264   ;;  %v207_v43 = vshrl.u32 %v206_v39, 7  ;;  %s323_s29 = sshll.u32 %s557_s3, 4  ;;  %s324_s29 = int_to_ptr.hbm [resolvable:$true] %s323_s29 }
  0x15   :  { %192 = vmatpush.bf16.msra.mxu2 %v380_v17  ;;  %v356_v35 = vor.u32 %v403_v32, %v355_v31  ;;  %v399_v36 = vld [vmem:[#allocation2] sm:$0xff]  ;;  %s512_s30 = smov 128   ;;  %s513_s4 = smov 8  }
  0x16   :  { %v215_v45 = vand.u32 15, %v207_v43  ;;  %vm267_vm2 = vcmp.lt.s32.totalorder %v207_v43, 1  ;;  %v208_v52 = vadd.s32 8, %v207_v43  ;;  %vm288_vm3 = vcmp.lt.s32.totalorder %v207_v43, 7  ;;  %v426_v58 = vld [vmem:[%s556_s2] ss:$0 sm:$0xff] }
  0x17   :  { %155 = vmatpush.bf16.msra.mxu0 %v360_v24  ;;  %415 = vmatpush.bf16.msra.mxu3 %v360_v24  ;;  %v209_v59 = vadd.s32 16, %v207_v43  ;;  %v210_v6 = vadd.s32 24, %v207_v43  ;;  %s511_s2 = smov [#allocation7]  }
  0x18   :  { %174 = vmatpush.bf16.msra.mxu1 %v364_v26  ;;  %vm259_vm1 = vcmp.eq.s32.totalorder %v215_v45, 0  ;;  %v222_v61 = vand.u32 15, %v208_v52  ;;  %s321_s26 = sshll.u32 %s511_s2, 4  ;;  %s322_s26 = int_to_ptr.vmem [resolvable:$true] %s321_s26 }
  0x19   :  { %193 = vmatpush.bf16.msra.mxu2 %v368_v27  ;;  %v229_v3 = vand.u32 15, %v209_v59  ;;  %v236_v13 = vand.u32 15, %v210_v6 }
  0x1a   :  { %vm281_vm4 = vcmp.eq.s32.totalorder %v222_v61, 15 }
  0x1b   :  { %156 = vmatpush.bf16.msra.mxu0 %v348_v33  ;;  %416 = vmatpush.bf16.msra.mxu3 %v348_v33  ;;  %vm261_vm5 = vcmp.eq.s32.totalorder %v229_v3, 0  ;;  %vm283_vm6 = vcmp.eq.s32.totalorder %v236_v13, 15 }
  0x1c   :  { %175 = vmatpush.bf16.msra.mxu1 %v352_v34 }
  0x1d   :  { %194 = vmatpush.bf16.msra.mxu2 %v356_v35 }
  0x1e   :  { %393 = vmatmul.msk.bf16.vlgmr.msra.gmra.mxu0 %vm142_vm0, %v399_v36  ;;  %394 = vmatmul.msk.bf16.vlgmr.msra.gmra.mxu3 %vm142_vm0, %v400_v37 }
  0x1f   :  { %395 = vmatmul.msk.bf16.vlgmr.msra.gmra.mxu1 %vm142_vm0, %v399_v36 }
  0x20   :  { %397 = vmatmul.msk.bf16.vlgmr.msra.gmra.mxu2 %vm142_vm0, %v399_v36 }
  0x2f   :  { %396 = vmatmul.msk.bf16.gmra.mxu1 %vm142_vm0, %v400_v37 }
  0x30   :  { %398 = vmatmul.msk.bf16.gmra.mxu2 %vm142_vm0, %v400_v37 }
  0x9b   :  { %v158_v40 = vpop.f32.mrf.mxu0 }
  0x9c   :  { %v177_v38 = vpop.f32.mrf.mxu1  ;;  %v263_v47 = vrot.slane %v158_v40, 7 }
  0xa1   :  { %v163_v41 = vpop.f32.mrf.mxu3 }
  0xa2   :  { %v265_v0 = vrot.slane %v163_v41, 7 }
  0xa3   :  { %v196_v42 = vpop.f32.mrf.mxu2  ;;  %v160_v50 = vpop.f32.mrf.mxu0 }
  0xa4   :  { %v179_v44 = vpop.f32.mrf.mxu1  ;;  %v284_v54 = vrot.slane %v196_v42, 1  ;;  %v264_v56 = vrot.slane %v160_v50, 7 }
  0xa6   :  { %v270_v1 = vsel %vm267_vm2, %v263_v47, %v264_v56  ;;  %v269_v10 = vsel %vm267_vm2, %v264_v56, %v265_v0 }
  0xa7   :  { %v277_v8 = vadd.f32 %v270_v1, %v179_v44  ;;  %v274_v14 = vsel %vm261_vm5, 0.0, %v269_v10 }
  0xa9   :  { %v165_v46 = vpop.f32.mrf.mxu3 }
  0xaa   :  { %v266_v48 = vrot.slane %v165_v46, 7 }
  0xab   :  { %v198_v49 = vpop.f32.mrf.mxu2 }
  0xac   :  { %v285_v51 = vrot.slane %v198_v49, 1  ;;  %v271_v53 = vsel %vm267_vm2, %v266_v48, %v263_v47  ;;  %v182_v63 = vpop.f32.mrf.mxu1  ;;  %v268_v17 = vsel %vm267_vm2, %v265_v0, %v266_v48 }
  0xad   :  { %v272_v55 = vsel %vm259_vm1, 0.0, %v271_v53  ;;  %v278_v21 = vadd.f32 %v274_v14, %v182_v63 }
  0xae   :  { %v276_v57 = vadd.f32 %v272_v55, %v177_v38  ;;  %v291_v60 = vsel %vm288_vm3, %v284_v54, %v285_v51 }
  0xb0   :  { %v297_v62 = vadd.f32 %v291_v60, %v276_v57 }
  0xb2   :  { %v305_v2 = vadd.f32 %v426_v58, %v297_v62 }
  0xb3   :  { %v201_v4 = vpop.f32.mrf.mxu2 }
  0xb4   :  { %v286_v5 = vrot.slane %v201_v4, 1  ;;  %v309_v7 = vmax.f32 %v305_v2, 0.0  ;;  %v184_v16 = vpop.f32.mrf.mxu1 }
  0xb5   :  { %v279_v22 = vadd.f32 %v268_v17, %v184_v16 }
  0xb6   :  { %v290_v9 = vsel %vm288_vm3, %v285_v51, %v286_v5  ;;  %313 = vst [vmem:[#allocation7] sm:$0xff] %v309_v7 }
  0xb7   :  { %v294_v11 = vsel %vm281_vm4, 0.0, %v290_v9 }
  0xb8   :  { %v298_v12 = vadd.f32 %v294_v11, %v277_v8 }
  0xba   :  { %v306_v15 = vadd.f32 %v426_v58, %v298_v12 }
  0xbb   :  { %v203_v18 = vpop.f32.mrf.mxu2 }
  0xbc   :  { %v310_v19 = vmax.f32 %v306_v15, 0.0  ;;  %v287_v20 = vrot.slane %v203_v18, 1 }
  0xbe   :  { %314 = vst [vmem:[#allocation7 + $0x8] sm:$0xff] %v310_v19  ;;  %v289_v23 = vsel %vm288_vm3, %v286_v5, %v287_v20  ;;  %v292_v24 = vsel %vm288_vm3, %v287_v20, %v284_v54 }
  0xbf   :  { %v296_v25 = vsel %vm283_vm6, 0.0, %v292_v24  ;;  %v299_v26 = vadd.f32 %v289_v23, %v278_v21 }
  0xc0   :  { %v300_v27 = vadd.f32 %v296_v25, %v279_v22 }
  0xc1   :  { %v307_v28 = vadd.f32 %v426_v58, %v299_v26 }
  0xc2   :  { %v308_v29 = vadd.f32 %v426_v58, %v300_v27 }
  0xc3   :  { %v311_v30 = vmax.f32 %v307_v28, 0.0 }
  0xc4   :  { %v312_v31 = vmax.f32 %v308_v29, 0.0 }
  0xc5   :  { %315 = vst [vmem:[#allocation7 + $0x10] sm:$0xff] %v311_v30 }
  0xc6   :  { %316 = vst [vmem:[#allocation7 + $0x18] sm:$0xff] %v312_v31 }
  0xc7   :  { %329 = dma.vmem_to_hbm [thread:$0]  %s322_s26, 512, %s324_s29, [#allocation4], %s512_s30, %s512_s30, %s513_s4  }
  0xc8   :  { %503 = dma.done.wait [#allocation4], 512  }
  0xc9   :  { %504 = vsyncadd [#allocation4], 4294966784 }
  0xca   :  { %334 = vsyncpa [#allocation3], 1 }
  0xcb   :  { %335 = vsyncpa [#allocation6], 1 }
  0xcc   :  { %336 = vsyncpa [#allocation4], 1 }

</bundles_post_ra>
